<compile_context>
chip_gen: v6e
topology: v6e:2x2x1
jax: 0.10.0
libtpu: 0.0.40
codegen_flags: <defaults>
</compile_context>

<pallas_src>
import jax
import jax.numpy as jnp
from jax.experimental import pallas as pl
from jax.experimental.pallas import tpu as pltpu

HIDDEN = 20
LAYER_DIMS = [(4, 20), (20, 20), (20, 20), (20, 20), (20, 1)]  # (fan_in, fan_out)


def mlp_kernel(x_ref, w_ref, b_ref, o_ref):
    """Full 5-layer MLP on one (1, BM) batch tile; activations are (feat, BM)."""
    x = x_ref[...]                                   # (1, BM), batch on lanes
    cx = jnp.cos(x)                                  # EUP
    sx = jnp.sin(x)                                  # EUP
    xs = x * sx

    # --- layer 1: basis expansion fused as outer-product broadcasts (VPU) ---
    w1 = w_ref[0]                                    # (20, 20); cols 0:4 = W1 (out,in)
    h = (w1[:, 0:1] * x
         + w1[:, 1:2] * cx
         + w1[:, 2:3] * sx
         + w1[:, 3:4] * xs
         + b_ref[0])                                 # (20, BM)
    h = jnp.maximum(h, 0.0)

    # --- layers 2-4: (20,20) @ (20,BM) single MXU pass each + bias + ReLU ---
    for l in (1, 2, 3):
        w = w_ref[l]                                 # (20, 20)
        h = jnp.maximum(
            jnp.dot(w, h, preferred_element_type=jnp.float32) + b_ref[l], 0.0)

    # --- layer 5: (1,20) @ (20,BM) -> lane-dense (1, BM) output row ---
    w5 = w_ref[4]                                    # (20, 20); row 0 = W5
    b5 = b_ref[4]                                    # (20, 1);  row 0 = b5
    o_ref[...] = (
        jnp.dot(w5[0:1, :], h, preferred_element_type=jnp.float32) + b5[0:1, :])


def pack_params(params):
    """Pack five (W:(in,out), b:(1,out)) pairs into two tile-friendly buffers."""
    w_packed = jnp.zeros((5, HIDDEN, HIDDEN), jnp.float32)
    b_packed = jnp.zeros((5, HIDDEN, 1), jnp.float32)
    for l, (w, b) in enumerate(params):
        fan_in, fan_out = w.shape
        w_packed = w_packed.at[l, :fan_out, :fan_in].set(
            w.T.astype(jnp.float32))                 # stored (out, in)
        b_packed = b_packed.at[l, :fan_out, 0].set(
            b.reshape(-1).astype(jnp.float32))
    return w_packed, b_packed


def neural_network_forward(x_raw, params, *, block_m=128):
    """x_raw: (N, 1) float32.  Returns (N, 1) float32."""
    n = x_raw.shape[0]
    w_packed, b_packed = pack_params(params)

    n_blocks = pl.cdiv(n, block_m)
    n_pad = n_blocks * block_m
    x_row = jnp.pad(x_raw.reshape(-1).astype(jnp.float32), (0, n_pad - n))
    x_row = x_row.reshape(1, n_pad)                  # batch on lanes

    out_row = pl.pallas_call(
        mlp_kernel,
        out_shape=jax.ShapeDtypeStruct((1, n_pad), jnp.float32),
        grid=(n_blocks,),
        in_specs=[
            pl.BlockSpec((1, block_m), lambda i: (0, i)),        # raw scalar input
            pl.BlockSpec(w_packed.shape, lambda i: (0, 0, 0)),   # packed weights
            pl.BlockSpec(b_packed.shape, lambda i: (0, 0, 0)),   # packed biases
        ],
        out_specs=pl.BlockSpec((1, block_m), lambda i: (0, i)),
        compiler_params=pltpu.CompilerParams(
            dimension_semantics=("parallel",)),
    )(x_row, w_packed, b_packed)

    return out_row[0, :n].reshape(n, 1)


def init_params(key):
    """Deterministic init mimicking nn.Linear shapes (weights stored as (in, out))."""
    params = []
    for (fan_in, fan_out) in LAYER_DIMS:
        key, kw, kb = jax.random.split(key, 3)
        bound = 1.0 / jnp.sqrt(fan_in)
        w = jax.random.uniform(kw, (fan_in, fan_out), jnp.float32, -bound, bound)
        b = jax.random.uniform(kb, (1, fan_out), jnp.float32, -bound, bound)
        params.append((w, b))
    return params


def reference_forward(x_raw, params):
    """Pure-JAX reference for correctness check."""
    x = jnp.concatenate(
        [x_raw, jnp.cos(x_raw), jnp.sin(x_raw), x_raw * jnp.sin(x_raw)], axis=1)
    (w1, b1), (w2, b2), (w3, b3), (w4, b4), (w5, b5) = params
    h = jnp.maximum(x @ w1 + b1, 0.0)
    h = jnp.maximum(h @ w2 + b2, 0.0)
    h = jnp.maximum(h @ w3 + b3, 0.0)
    h = jnp.maximum(h @ w4 + b4, 0.0)
    return h @ w5 + b5


if __name__ == "__main__":
    key = jax.random.PRNGKey(0)
    key, kx = jax.random.split(key)

    N = 250   # not a multiple of 128: exercises padding; grid = 2 (feeds both v7x TCs)
    x_raw = jax.random.uniform(kx, (N, 1), jnp.float32, -3.0, 3.0)
    params = init_params(key)

    out = jax.block_until_ready(neural_network_forward(x_raw, params))
    ref = reference_forward(x_raw, params)

    assert out.shape == (N, 1)
    assert jnp.allclose(out, ref, atol=1e-4, rtol=1e-4), "mismatch vs reference"

    print("KERNEL_OK")
</pallas_src>

<mosaic_0001>
module attributes {stable_mosaic.version = 11 : i64} {
  func.func @mlp_kernel(%arg0: i32, %arg1: memref<1x128xf32, #tpu.memory_space<vmem>>, %arg2: memref<5x20x20xf32, #tpu.memory_space<vmem>>, %arg3: memref<5x20x1xf32, #tpu.memory_space<vmem>>, %arg4: memref<1x128xf32, #tpu.memory_space<vmem>>) attributes {dimension_semantics = [#tpu.dimension_semantics<parallel>], iteration_bounds = array<i64: 2>, scalar_prefetch = 0 : i64, scratch_operands = 0 : i64, tpu.core_type = #tpu.core_type<tc>, window_params = [{transform_indices = @transform_0, window_bounds = array<i64: 1, 128>}, {pipeline_mode = #tpu.pipeline_mode<synchronous>, transform_indices = @transform_1, window_bounds = array<i64: 5, 20, 20>}, {pipeline_mode = #tpu.pipeline_mode<synchronous>, transform_indices = @transform_2, window_bounds = array<i64: 5, 20, 1>}, {transform_indices = @transform_3, window_bounds = array<i64: 1, 128>}]} {
    %c0 = arith.constant 0 : index
    %c0_0 = arith.constant 0 : index
    %0 = vector.load %arg1[%c0, %c0_0] : memref<1x128xf32, #tpu.memory_space<vmem>>, vector<1x128xf32>
    %1 = math.cos %0 : vector<1x128xf32>
    %2 = math.sin %0 : vector<1x128xf32>
    %3 = arith.mulf %0, %2 : vector<1x128xf32>
    %c0_1 = arith.constant 0 : index
    %c0_2 = arith.constant 0 : index
    %c0_3 = arith.constant 0 : index
    %4 = vector.load %arg2[%c0_1, %c0_2, %c0_3] : memref<5x20x20xf32, #tpu.memory_space<vmem>>, vector<1x20x20xf32>
    %5 = vector.shape_cast %4 : vector<1x20x20xf32> to vector<20x20xf32>
    %6 = vector.extract_strided_slice %5 {offsets = [0, 0], sizes = [20, 1], strides = [1, 1]} : vector<20x20xf32> to vector<20x1xf32>
    %7 = vector.broadcast %6 : vector<20x1xf32> to vector<20x128xf32>
    %8 = vector.broadcast %0 : vector<1x128xf32> to vector<20x128xf32>
    %9 = arith.mulf %7, %8 : vector<20x128xf32>
    %10 = vector.extract_strided_slice %5 {offsets = [0, 1], sizes = [20, 1], strides = [1, 1]} : vector<20x20xf32> to vector<20x1xf32>
    %11 = vector.broadcast %10 : vector<20x1xf32> to vector<20x128xf32>
    %12 = vector.broadcast %1 : vector<1x128xf32> to vector<20x128xf32>
    %13 = arith.mulf %11, %12 : vector<20x128xf32>
    %14 = arith.addf %9, %13 : vector<20x128xf32>
    %15 = vector.extract_strided_slice %5 {offsets = [0, 2], sizes = [20, 1], strides = [1, 1]} : vector<20x20xf32> to vector<20x1xf32>
    %16 = vector.broadcast %15 : vector<20x1xf32> to vector<20x128xf32>
    %17 = vector.broadcast %2 : vector<1x128xf32> to vector<20x128xf32>
    %18 = arith.mulf %16, %17 : vector<20x128xf32>
    %19 = arith.addf %14, %18 : vector<20x128xf32>
    %20 = vector.extract_strided_slice %5 {offsets = [0, 3], sizes = [20, 1], strides = [1, 1]} : vector<20x20xf32> to vector<20x1xf32>
    %21 = vector.broadcast %20 : vector<20x1xf32> to vector<20x128xf32>
    %22 = vector.broadcast %3 : vector<1x128xf32> to vector<20x128xf32>
    %23 = arith.mulf %21, %22 : vector<20x128xf32>
    %24 = arith.addf %19, %23 : vector<20x128xf32>
    %c0_4 = arith.constant 0 : index
    %c0_5 = arith.constant 0 : index
    %c0_6 = arith.constant 0 : index
    %25 = vector.load %arg3[%c0_4, %c0_5, %c0_6] : memref<5x20x1xf32, #tpu.memory_space<vmem>>, vector<1x20x1xf32>
    %26 = vector.shape_cast %25 : vector<1x20x1xf32> to vector<20x1xf32>
    %27 = vector.broadcast %26 : vector<20x1xf32> to vector<20x128xf32>
    %28 = arith.addf %24, %27 : vector<20x128xf32>
    %cst = arith.constant 0.000000e+00 : f32
    %29 = vector.broadcast %cst : f32 to vector<20x128xf32>
    %30 = arith.maximumf %28, %29 : vector<20x128xf32>
    %c1 = arith.constant 1 : index
    %c0_7 = arith.constant 0 : index
    %c0_8 = arith.constant 0 : index
    %31 = vector.load %arg2[%c1, %c0_7, %c0_8] : memref<5x20x20xf32, #tpu.memory_space<vmem>>, vector<1x20x20xf32>
    %32 = vector.shape_cast %31 : vector<1x20x20xf32> to vector<20x20xf32>
    %cst_9 = arith.constant dense<0.000000e+00> : vector<20x128xf32>
    %33 = tpu.matmul %32, %30, %cst_9 {dimension_numbers = #tpu.dot_dimension_numbers<[1], [0], [0], [1], [0, 0, 1, 1], [], []>} : vector<20x20xf32>, vector<20x128xf32>, vector<20x128xf32> -> vector<20x128xf32>
    %c1_10 = arith.constant 1 : index
    %c0_11 = arith.constant 0 : index
    %c0_12 = arith.constant 0 : index
    %34 = vector.load %arg3[%c1_10, %c0_11, %c0_12] : memref<5x20x1xf32, #tpu.memory_space<vmem>>, vector<1x20x1xf32>
    %35 = vector.shape_cast %34 : vector<1x20x1xf32> to vector<20x1xf32>
    %36 = vector.broadcast %35 : vector<20x1xf32> to vector<20x128xf32>
    %37 = arith.addf %33, %36 : vector<20x128xf32>
    %cst_13 = arith.constant 0.000000e+00 : f32
    %38 = vector.broadcast %cst_13 : f32 to vector<20x128xf32>
    %39 = arith.maximumf %37, %38 : vector<20x128xf32>
    %c2 = arith.constant 2 : index
    %c0_14 = arith.constant 0 : index
    %c0_15 = arith.constant 0 : index
    %40 = vector.load %arg2[%c2, %c0_14, %c0_15] : memref<5x20x20xf32, #tpu.memory_space<vmem>>, vector<1x20x20xf32>
    %41 = vector.shape_cast %40 : vector<1x20x20xf32> to vector<20x20xf32>
    %cst_16 = arith.constant dense<0.000000e+00> : vector<20x128xf32>
    %42 = tpu.matmul %41, %39, %cst_16 {dimension_numbers = #tpu.dot_dimension_numbers<[1], [0], [0], [1], [0, 0, 1, 1], [], []>} : vector<20x20xf32>, vector<20x128xf32>, vector<20x128xf32> -> vector<20x128xf32>
    %c2_17 = arith.constant 2 : index
    %c0_18 = arith.constant 0 : index
    %c0_19 = arith.constant 0 : index
    %43 = vector.load %arg3[%c2_17, %c0_18, %c0_19] : memref<5x20x1xf32, #tpu.memory_space<vmem>>, vector<1x20x1xf32>
    %44 = vector.shape_cast %43 : vector<1x20x1xf32> to vector<20x1xf32>
    %45 = vector.broadcast %44 : vector<20x1xf32> to vector<20x128xf32>
    %46 = arith.addf %42, %45 : vector<20x128xf32>
    %cst_20 = arith.constant 0.000000e+00 : f32
    %47 = vector.broadcast %cst_20 : f32 to vector<20x128xf32>
    %48 = arith.maximumf %46, %47 : vector<20x128xf32>
    %c3 = arith.constant 3 : index
    %c0_21 = arith.constant 0 : index
    %c0_22 = arith.constant 0 : index
    %49 = vector.load %arg2[%c3, %c0_21, %c0_22] : memref<5x20x20xf32, #tpu.memory_space<vmem>>, vector<1x20x20xf32>
    %50 = vector.shape_cast %49 : vector<1x20x20xf32> to vector<20x20xf32>
    %cst_23 = arith.constant dense<0.000000e+00> : vector<20x128xf32>
    %51 = tpu.matmul %50, %48, %cst_23 {dimension_numbers = #tpu.dot_dimension_numbers<[1], [0], [0], [1], [0, 0, 1, 1], [], []>} : vector<20x20xf32>, vector<20x128xf32>, vector<20x128xf32> -> vector<20x128xf32>
    %c3_24 = arith.constant 3 : index
    %c0_25 = arith.constant 0 : index
    %c0_26 = arith.constant 0 : index
    %52 = vector.load %arg3[%c3_24, %c0_25, %c0_26] : memref<5x20x1xf32, #tpu.memory_space<vmem>>, vector<1x20x1xf32>
    %53 = vector.shape_cast %52 : vector<1x20x1xf32> to vector<20x1xf32>
    %54 = vector.broadcast %53 : vector<20x1xf32> to vector<20x128xf32>
    %55 = arith.addf %51, %54 : vector<20x128xf32>
    %cst_27 = arith.constant 0.000000e+00 : f32
    %56 = vector.broadcast %cst_27 : f32 to vector<20x128xf32>
    %57 = arith.maximumf %55, %56 : vector<20x128xf32>
    %c4 = arith.constant 4 : index
    %c0_28 = arith.constant 0 : index
    %c0_29 = arith.constant 0 : index
    %58 = vector.load %arg2[%c4, %c0_28, %c0_29] : memref<5x20x20xf32, #tpu.memory_space<vmem>>, vector<1x20x20xf32>
    %59 = vector.shape_cast %58 : vector<1x20x20xf32> to vector<20x20xf32>
    %c4_30 = arith.constant 4 : index
    %c0_31 = arith.constant 0 : index
    %c0_32 = arith.constant 0 : index
    %60 = vector.load %arg3[%c4_30, %c0_31, %c0_32] : memref<5x20x1xf32, #tpu.memory_space<vmem>>, vector<1x20x1xf32>
    %61 = vector.shape_cast %60 : vector<1x20x1xf32> to vector<20x1xf32>
    %62 = vector.extract_strided_slice %59 {offsets = [0, 0], sizes = [1, 20], strides = [1, 1]} : vector<20x20xf32> to vector<1x20xf32>
    %cst_33 = arith.constant dense<0.000000e+00> : vector<1x128xf32>
    %63 = tpu.matmul %62, %57, %cst_33 {dimension_numbers = #tpu.dot_dimension_numbers<[1], [0], [0], [1], [0, 0, 1, 1], [], []>} : vector<1x20xf32>, vector<20x128xf32>, vector<1x128xf32> -> vector<1x128xf32>
    %64 = vector.extract_strided_slice %61 {offsets = [0, 0], sizes = [1, 1], strides = [1, 1]} : vector<20x1xf32> to vector<1x1xf32>
    %65 = vector.broadcast %64 : vector<1x1xf32> to vector<1x128xf32>
    %66 = arith.addf %63, %65 : vector<1x128xf32>
    %c0_34 = arith.constant 0 : index
    %c0_35 = arith.constant 0 : index
    %67 = vector.load %arg4[%c0_34, %c0_35] : memref<1x128xf32, #tpu.memory_space<vmem>>, vector<1x128xf32>
    tpu.vector_store %arg4[%c0_34, %c0_35], %66 {strides = array<i32>} : memref<1x128xf32, #tpu.memory_space<vmem>>, vector<1x128xf32>,
    return
  }
  func.func @transform_0(%arg0: i32) -> (i32, i32) {
    %c0_i32 = arith.constant 0 : i32
    %c0_i32_0 = arith.constant 0 : i32
    return %c0_i32, %arg0 : i32, i32
  }
  func.func @transform_1(%arg0: i32) -> (i32, i32, i32) {
    %c0_i32 = arith.constant 0 : i32
    %c0_i32_0 = arith.constant 0 : i32
    %c0_i32_1 = arith.constant 0 : i32
    %c0_i32_2 = arith.constant 0 : i32
    return %c0_i32, %c0_i32_0, %c0_i32_1 : i32, i32, i32
  }
  func.func @transform_2(%arg0: i32) -> (i32, i32, i32) {
    %c0_i32 = arith.constant 0 : i32
    %c0_i32_0 = arith.constant 0 : i32
    %c0_i32_1 = arith.constant 0 : i32
    %c0_i32_2 = arith.constant 0 : i32
    return %c0_i32, %c0_i32_0, %c0_i32_1 : i32, i32, i32
  }
  func.func @transform_3(%arg0: i32) -> (i32, i32) {
    %c0_i32 = arith.constant 0 : i32
    %c0_i32_0 = arith.constant 0 : i32
    return %c0_i32, %arg0 : i32, i32
  }
}

</mosaic_0001>

<bundles_post_ra>
// kernel: tpu_custom_call.1
= control target key start
LH: loop header
LB: loop body
LE: loop exit
PB: predicated region body
PF: predicated region fallthrough
CT: control target
= control target key end

     0   :  { %8 = vsyncpa [#allocation3], 0  ;;  %s1557_s0 = inlined_call_operand.vmem [shape: f32[1,256], index: 0, kind: input, shape index: {}]   ;;  %s1558_s1 = inlined_call_operand.vmem [shape: f32[5,20,20], index: 1, kind: input, shape index: {}]   ;;  %s1559_s2 = inlined_call_operand.vmem [shape: f32[5,20,1], index: 2, kind: input, shape index: {}]   ;;  %s1560_s3 = inlined_call_operand.hbm [shape: f32[1,256], index: 3, kind: output, shape index: {}]  }
   0x1   :  { %10 = vsyncpa [#allocation3 + $0x1], 0  ;;  %s1297_s12 = smov 0   ;;  %s1299_s13 = smov 0  }
   0x2   :  { %s1301_s14 = smov 0   ;;  %s1303_s15 = smov 0  }
   0x3 LB: > { %s1318_s16 = sadd.s32 4294967295, %s1262_s15   ;;  %s1001_s17 = sadd.s32 4294967294, %s1262_s15   ;;  %s1262_s15 = sphi %s1303_s15, %s1566_s15   ;;  %s1258_s14 = sphi %s1301_s14, %s1565_s14   ;;  %s1254_s13 = sphi %s1299_s13, %s1564_s13   ;;  %s1250_s12 = sphi %s1297_s12, %s1563_s12  }
   0x4   : > { %s1322_s18 = sadd.s32 1, %s1262_s15   ;;  %s91_s19 = sadd.s32 1, %s1258_s14 }
   0x5   : > { %s88_s20 = ssub.s32 %s1262_s15, %s1322_s18  ;;  %p101_p0 = scmp.ne.s32.totalorder %s1258_s14, %s1254_s13 }
   0x6   : > { %p89_p1 = scmp.eq.s32.totalorder %s88_s20, 0  ;;  %p102_p2 = scmp.eq.s32.totalorder %s1318_s16, 1 }
   0x7   : > { %p107_p3 = scmp.ne.s32.totalorder %s1254_s13, %s1250_s12  ;;  %p108_p4 = scmp.eq.s32.totalorder %s1001_s17, 1 }
   0x8   : > { %s1333_s21 = scalar_select %p89_p1, %s1258_s14, %s91_s19  }
   0x9   : > { %p1335_p5 = por %p102_p2, %p101_p0  ;;  %p1339_p6 = por %p108_p4, %p107_p3 }
   0xa   : > { %p1004_p7 = scmp.ge.s32.totalorder %s1262_s15, 1  ;;  %p138_p8 = scmp.lt.s32.totalorder %s1262_s15, 3 }
   0xc   : > { %p139_p9 = pnand %p1004_p7, %p138_p8 }
   0xd   : > { %p159_p10 = scmp.lt.s32.totalorder (!%p139_p9), %s1318_s16, 1  ;;  %s157_s26 = sand.u32 (!%p139_p9), 1, %s1254_s13  }
   0xe   : > { %142 = sbr.rel (%p139_p9) target bundleno = 1020 (0x3fc), region = 32  ;;  %s1047_s27 = sshll.u32 (!%p139_p9), %s1318_s16, 4 }
   0xf   : > { %s1522_s5 = scalar_lea.hbm (!%p139_p9), %s1560_s3, %s1047_s27  ;;  %s937_s6 = scalar_lea.sflag (!%p139_p9), [#allocation3], %s157_s26 }
  0x13   : > { %v373_v0 = vld [vmem:[%s1558_s1 + $0x10] sm:$0xf]  ;;  %v1351_v1 = vld [vmem:[%s1558_s1 + $0x8] sm:$0xff]  ;;  %v1264_v2 = vmov 1   ;;  %v1265_v3 = vmov 0   ;;  %s160_s28 = scalar_select %p159_p10, %s1318_s16, 1 }
  0x14   : > { %1187 = vset.pattern.permute.xlu0 %v1264_v2  ;;  %1189 = vset.pattern.permute.xlu1 %v1265_v3  ;;  %v371_v6 = vld [vmem:[%s1558_s1] sm:$0xff]  ;;  %v1266_v9 = vmov 2   ;;  %v1267_v13 = vmov 3   ;;  %v1268_v19 = vmov 683565275   ;;  %v471_v32 = vld [vmem:[%s1559_s2 + $0x8] sm:$0xff] }
  0x15   : > { %407 = vperm.xlu0 %1187, %v373_v0   ;;  %381 = vperm.xlu1 %1189, %v1351_v1   ;;  %s161_s4 = scalar_lea.vmem %s1557_s0, %s160_s28  ;;  %v1269_v21 = vmov 2475754826   ;;  %v1270_v23 = vmov 2131351028   ;;  %v1271_v25 = vmov 2102212464  }
  0x16   : > { %v1361_v4 = vld [vmem:[%s161_s4] sm:$0x1]  ;;  %v1272_v27 = vmov 920167782   ;;  %v1273_v34 = vmov 1326507024  }
  0x17   : > { %v166_v5 = vand.u32 2139095040, %v1361_v4  ;;  %v163_v8 = vand.u32 2147483647, %v1361_v4  ;;  %v1017_v46 = vld [vmem:[%s1559_s2 + $0x20] sm:$0xff]  ;;  %v472_v61 = vld [vmem:[%s1559_s2 + $0x10] sm:$0xf]  ;;  %vm255_vm15 = vweird.f32 %v1361_v4 }
  0x18   : > { %v1028_v59 = vld [vmem:[%s1559_s2 + $0x40] sm:$0xf]  ;;  %v1026_v63 = vld [vmem:[%s1559_s2 + $0x30] sm:$0xff]  ;;  %vm1275_vm6 = vmmov 0   ;;  %vm165_vm8 = vcmp.lt.s32.totalorder %v1361_v4, 0  ;;  %s158_s28 = scalar_lea.vmem [#allocation2], %s157_s26 }
  0x19   : > { %1188 = vset.pattern.permute.xlu0 %v1265_v3  ;;  %1190 = vset.pattern.permute.xlu1 %v1264_v2  ;;  %v167_v7 = vshrl.u32 %v166_v5, 23  ;;  %v170_v12 = vand.u32 8388607, %v163_v8  ;;  %v470_v5 = vld [vmem:[%s1559_s2] sm:$0xff]  ;;  %vm164_vm9 = vcmp.le.f32.partialorder %v163_v8, 0.7853982  ;;  %v390_v8 = vlaneseq }
  0x1a   : > { %386 = vperm.xlu0 %1188, %v373_v0   ;;  %403 = vperm.xlu1 %1190, %v1351_v1   ;;  %s949_s29 = sshll.u32 %s158_s28, 4  ;;  %s1276_s16 = smov [#allocation2]   ;;  %s950_s29 = int_to_ptr.vmem [resolvable:$true] %s949_s29 }
  0x1b   : > { %v1005_v10 = vadd.s32 4294967169, %v167_v7  ;;  %v171_v16 = vor.u32 8388608, %v170_v12  ;;  %s1202_s7 = scalar_lea.vmem %s950_s29, 16  ;;  %s1206_s8 = sshll.u32 %s1276_s16, 4  ;;  %s1207_s8 = int_to_ptr.vmem [resolvable:$false] %s1206_s8 }
  0x1c   : > { %p1203_p11 = scmp.ne.s32.totalorder %s950_s29, %s1202_s7  ;;  %s1208_s9 = scalar_lea.vmem %s1207_s8, 32 }
  0x1d   : > { %v173_v11 = vadd.s32 1, %v1005_v10  ;;  %v211_v36 = vshll.u32 %v171_v16, 8  ;;  %p1209_p0 = scmp.lt.s32.totalorder %s950_s29, %s1207_s8  ;;  %p1210_p1 = scmp.lt.s32.totalorder %s1208_s9, %s1202_s7 }
  0x1e   : > { %1191 = vset.pattern.permute.xlu1 %v1266_v9  ;;  %376 = vperm.xlu0 %1188, %v371_v6   ;;  %p1204_p12 = pnand %p1203_p11, %p1335_p5 }
  0x1f   : > { %431 = vperm.xlu1 %1191, %v373_v0   ;;  %vm174_vm0 = vcmp.gt.s32.totalorder %v173_v11, 0  ;;  %p1211_p2 = por %p1210_p1, %p1209_p0 }
  0x20   : > { %v175_v14 = vsel %vm174_vm0, %v173_v11, 0  ;;  %v1016_v11 = vld [vmem:[%s1559_s2 + $0x18] sm:$0xff]  ;;  %p1205_p13 = pneg %p1204_p12 }
  0x21   : > { %v177_v15 = vand.u32 31, %v175_v14  ;;  %v176_v17 = vshrl.u32 %v175_v14, 5 }
  0x22   : > { %1194 = vset.pattern.permute.xlu0 %v1267_v13  ;;  %p1212_p3 = pnand %p1211_p2, %p1205_p13 }
  0x23   : > { %1192 = vset.pattern.permute.xlu1 %v1264_v2  ;;  %455 = vperm.xlu0 %1194, %v373_v0   ;;  %v178_v18 = vsub.s32 32, %v177_v15  ;;  %v180_v20 = vshll.u32 %v1268_v19, %v177_v15  ;;  %v183_v22 = vshll.u32 %v1269_v21, %v177_v15  ;;  %v186_v24 = vshll.u32 %v1270_v23, %v177_v15 }
  0x24   : > { %399 = vperm.xlu1 %1192, %v371_v6   ;;  %v189_v26 = vshll.u32 %v1271_v25, %v177_v15  ;;  %v192_v28 = vshll.u32 %v1272_v27, %v177_v15  ;;  %vm195_vm1 = vcmp.lt.s32.totalorder %v176_v17, 1  ;;  %vm198_vm2 = vcmp.lt.s32.totalorder %v176_v17, 4  ;;  %v1038_v15 = vld [vmem:[%s1559_s2 + $0x58] sm:$0xf] }
  0x25   : > { %v181_v29 = vshrl.u32 %v1269_v21, %v178_v18  ;;  %v184_v30 = vshrl.u32 %v1270_v23, %v178_v18  ;;  %v187_v31 = vshrl.u32 %v1271_v25, %v178_v18  ;;  %v190_v33 = vshrl.u32 %v1272_v27, %v178_v18 }
  0x26   : > { %v193_v35 = vshrl.u32 %v1273_v34, %v178_v18  ;;  %v179_v40 = vshrl.u32 %v1268_v19, %v178_v18  ;;  %vm197_vm3 = vcmp.lt.s32.totalorder %v176_v17, 3  ;;  %vm196_vm4 = vcmp.lt.s32.totalorder %v176_v17, 2  ;;  %v1036_v17 = vld [vmem:[%s1559_s2 + $0x48] sm:$0xff] }
  0x27   : > { %447 = vperm.xlu0 %1194, %v371_v6   ;;  %v182_v37 = vor.u32 %v181_v29, %v180_v20  ;;  %v185_v38 = vor.u32 %v184_v30, %v183_v22  ;;  %v188_v39 = vor.u32 %v187_v31, %v186_v24  ;;  %v191_v41 = vor.u32 %v190_v33, %v189_v26 }
  0x28   : > { %1193 = vset.pattern.permute.xlu1 %v1266_v9  ;;  %v194_v42 = vor.u32 %v193_v35, %v192_v28  ;;  %v1274_v2 = vmov 0.0   ;;  %v1044_v9 = vld [vmem:[%s1559_s2 + $0x60] sm:$0xff] }
  0x29   : > { %427 = vperm.xlu1 %1193, %v1351_v1   ;;  %v200_v43 = vsel %vm198_vm2, %v188_v39, 2102212464  ;;  %v203_v44 = vsel %vm195_vm1, %v182_v37, %v185_v38  ;;  %v207_v45 = vsel %vm195_vm1, %v185_v38, %v188_v39  ;;  %v204_v47 = vsel %vm198_vm2, %v191_v41, 920167782  ;;  %1072 = vmatprep.subr.mxu0 %v1274_v2 }
  0x2a   : > { %v208_v48 = vsel %vm198_vm2, %v194_v42, 1326507024  ;;  %v205_v49 = vsel %vm197_vm3, %v188_v39, %v204_v47  ;;  %v199_v51 = vsel %vm195_vm1, %v179_v40, %v182_v37  ;;  %v201_v52 = vsel %vm197_vm3, %v185_v38, %v200_v43  ;;  %1126 = vmatprep.subr.mxu1 %v1274_v2  ;;  %1078 = vmatprep.mubr.msk.f32.mxu0 %vm1275_vm6, %v1274_v2 }
  0x2b   : > { %1197 = vset.pattern.permute.xlu0 %v1265_v3  ;;  %v209_v50 = vsel %vm197_vm3, %v191_v41, %v208_v48  ;;  %v206_v53 = vsel %vm196_vm4, %v203_v44, %v205_v49  ;;  %v202_v60 = vsel %vm196_vm4, %v199_v51, %v201_v52  ;;  %1084 = vmatprep.mubr.msk.f32.mxu1 %vm1275_vm6, %v1274_v2  ;;  %vm527_vm1 = vcmask 1043456  }
  0x2c   : > { %480 = vperm.xlu0 %1197, %v471_v32   ;;  %v210_v54 = vsel %vm196_vm4, %v207_v45, %v209_v50  ;;  %v1387_v57 = vmul.u32.u64.low %v211_v36, %v206_v53  ;;  %v1388_v58 = vmul.u32.u64.high %v211_v36, %v206_v53, %v1387_v57  ;;  %v218_v0 = vmul.u32 %v211_v36, %v202_v60 }
  0x2d   : > { %423 = vperm.xlu1 %1193, %v371_v6   ;;  %v1384_v55 = vmul.u32.u64.low %v211_v36, %v210_v54  ;;  %v1385_v56 = vmul.u32.u64.high %v211_v36, %v210_v54, %v1384_v55  ;;  %v1037_v6 = vld [vmem:[%s1559_s2 + $0x50] sm:$0xff]  ;;  %vm517_vm2 = vcmask 162816  }
  0x2e   : > { %v221_v62 = vadd.s32 1, %v1388_v58  ;;  %v391_v55 = vshrl.u32 %v390_v8, 7 }
  0x2f   : > { %vm220_vm5 = vc.u32 %v1385_v56, %v1387_v57  ;;  %v219_v24 = vadd.s32 %v1387_v57, %v1385_v56 }
  0x30   : > { %509 = vperm.xlu0 %1197, %v1017_v46  }
  0x31   : > { %1195 = vset.pattern.permute.xlu1 %v1267_v13  ;;  %v1027_v13 = vld [vmem:[%s1559_s2 + $0x38] sm:$0xff] }
  0x32   : > { %451 = vperm.xlu1 %1195, %v1351_v1   ;;  %v222_v1 = vsel %vm220_vm5, %v221_v62, %v1388_v58 }
  0x33   : > { %v223_v7 = vadd.s32 %v222_v1, %v218_v0 }
  0x34   : > { %634 = vperm.xlu0 %1197, %v1028_v59  }
  0x35   : > { %v224_v10 = vadd.s32 536870912, %v223_v7 }
  0x36   : > { %1196 = vset.pattern.permute.xlu1 %v1265_v3  ;;  %v1018_v3 = vld [vmem:[%s1559_s2 + $0x28] sm:$0xf] }
  0x37   : > { %485 = vperm.xlu1 %1196, %v472_v61   ;;  %v225_v12 = vshrl.u32 %v224_v10, 30  ;;  %v392_v61 = vsub.s32 0, %v391_v55 }
  0x38   : > { %624 = vperm.xlu0 %1197, %v1026_v63  }
  0x39   : > { %v226_v14 = vshll.u32 %v225_v12, 30  ;;  %v249_v38 = vsub.s32 4, %v225_v12 }
  0x3b   : > { %475 = vperm.xlu1 %1196, %v470_v5   ;;  %v227_v16 = vsub.s32 %v223_v7, %v226_v14  ;;  %v250_v39 = vsel %vm165_vm8, %v249_v38, %v225_v12 }
  0x3c   : > { %747 = vperm.xlu0 %1197, %v1037_v6   ;;  %v252_v41 = vsel %vm164_vm9, 0, %v250_v39  ;;  %v393_v6 = vrot.slane %v1361_v4, %v392_v61 }
  0x3d   : > { %v229_v18 = vsub.s32 0, %v227_v16  ;;  %v359_v43 = vadd.s32 3, %v252_v41  ;;  %v256_v46 = vand.u32 3, %v252_v41 }
  0x3f   : > { %514 = vperm.xlu1 %1196, %v1018_v3   ;;  %v1006_v19 = vmin.u32 %v229_v18, %v227_v16  ;;  %v360_v50 = vand.u32 3, %v359_v43  ;;  %vm258_vm10 = vcmp.eq.s32.totalorder %v256_v46, 0  ;;  %vm261_vm11 = vcmp.eq.s32.totalorder %v256_v46, 2  ;;  %v1013_v43 = vld [vmem:[%s1558_s1 + $0x18] sm:$0xff] }
  0x40   : > { %856 = vperm.xlu0 %1197, %v1044_v9   ;;  %vm257_vm12 = vcmp.lt.s32.totalorder %v256_v46, 2 }
  0x41   : > { %v231_v20 = vclz %v1006_v19  ;;  %vm362_vm13 = vcmp.eq.s32.totalorder %v360_v50, 0  ;;  %vm365_vm14 = vcmp.eq.s32.totalorder %v360_v50, 2  ;;  %vm361_vm0 = vcmp.lt.s32.totalorder %v360_v50, 2 }
  0x43   : > { %504 = vperm.xlu1 %1196, %v1016_v11   ;;  %v1007_v21 = vadd.s32 4294967294, %v231_v20 }
  0x45   : > { %vm1008_vm7 = vcmp.lt.s32.totalorder %v1007_v21, 0 }
  0x46   : > { %v234_v22 = vsel %vm1008_vm7, 0, %v1007_v21 }
  0x47   : > { %629 = vperm.xlu1 %1196, %v1027_v13   ;;  %v239_v23 = vsub.s32 4294967266, %v234_v22  ;;  %v235_v25 = vsub.s32 32, %v234_v22  ;;  %v236_v27 = vshll.u32 %v227_v16, %v234_v22 }
  0x49   : > { %v240_v26 = vadd.s32 127, %v239_v23  ;;  %v237_v28 = vshrl.u32 %v219_v24, %v235_v25 }
  0x4b   : > { %752 = vperm.xlu1 %1196, %v1038_v15   ;;  %v241_v29 = vshll.u32 %v240_v26, 23  ;;  %v238_v30 = vor.u32 %v237_v28, %v236_v27 }
  0x4d   : > { %v242_v31 = vor.u32 4788187, %v241_v29  ;;  %v245_v33 = vcvt.s32.f32 %v238_v30 }
  0x4f   : > { %742 = vperm.xlu1 %1196, %v1036_v17   ;;  %v243_v32 = vand.u32 2147483647, %v242_v31 }
  0x51   : > { %v246_v34 = vmul.f32 %v245_v33, %v243_v32 }
  0x53   : > { %v247_v35 = vxor.u32 2147483648, %v246_v34 }
  0x55   : > { %v248_v36 = vsel %vm165_vm8, %v247_v35, %v246_v34 }
  0x56   : > { %v251_v37 = vsel %vm164_vm9, %v1361_v4, %v248_v36 }
  0x57   : > { %1198 = vcosq.f32 %v251_v37 }
  0x58   : > { %1200 = vsinq.f32 %v251_v37 }
  0x64   : > { %v1199_v42 = vpop.eup %1198 }
  0x65   : > { %v1201_v44 = vpop.eup %1200  ;;  %v262_v49 = vxor.u32 2147483648, %v1199_v42 }
  0x66   : > { %v259_v48 = vxor.u32 2147483648, %v1201_v44 }
  0x67   : > { %v263_v54 = vsel %vm261_vm11, %v262_v49, %v1201_v44  ;;  %v367_v58 = vsel %vm365_vm14, %v262_v49, %v1201_v44  ;;  %v1015_v44 = vld [vmem:[%s1558_s1 + $0x28] sm:$0xf] }
  0x68   : > { %v260_v53 = vsel %vm258_vm10, %v1199_v42, %v259_v48  ;;  %v364_v57 = vsel %vm362_vm13, %v1199_v42, %v259_v48 }
  0x69   : > { %v264_v56 = vsel %vm257_vm12, %v260_v53, %v263_v54  ;;  %v368_v63 = vsel %vm361_vm0, %v364_v57, %v367_v58 }
  0x6a   : > { %v265_v62 = vsel %vm255_vm15, nan, %v264_v56  ;;  %v369_v1 = vsel %vm255_vm15, nan, %v368_v63 }
  0x6b   : > { %v414_v0 = vrot.slane %v265_v62, %v392_v61  ;;  %v370_v7 = vmul.f32 %v369_v1, %v1361_v4  ;;  %v438_v11 = vrot.slane %v369_v1, %v392_v61  ;;  %v1025_v62 = vld [vmem:[%s1558_s1 + $0x40] sm:$0xf] }
  0x6d   : > { %v462_v14 = vrot.slane %v370_v7, %v392_v61  ;;  %v1024_v61 = vld [vmem:[%s1558_s1 + $0x38] sm:$0xff] }
  0x90   : > { %v382_v40 = vpop.permute.xlu1 %381  ;;  %v408_v45 = vpop.permute.xlu0 %407 }
  0x91   : > { %v418_v9 = vmul.f32 %v414_v0, %v408_v45  ;;  %v396_v15 = vmul.f32 %v393_v6, %v382_v40  ;;  %v1014_v45 = vld [vmem:[%s1558_s1 + $0x20] sm:$0xff] }
  0x95   : > { %v404_v47 = vpop.permute.xlu1 %403  ;;  %v387_v51 = vpop.permute.xlu0 %386 }
  0x96   : > { %v397_v10 = vmul.f32 %v393_v6, %v387_v51  ;;  %v417_v12 = vmul.f32 %v414_v0, %v404_v47 }
  0x98   : > { %v421_v17 = vadd.f32 %v418_v9, %v397_v10  ;;  %v420_v21 = vadd.f32 %v417_v12, %v396_v15 }
  0x99   : > { %v377_v60 = vpop.permute.xlu0 %376 }
  0x9a   : > { %v432_v52 = vpop.permute.xlu1 %431  ;;  %v395_v19 = vmul.f32 %v393_v6, %v377_v60  ;;  %v1023_v60 = vld [vmem:[%s1558_s1 + $0x30] sm:$0xff] }
  0x9b   : > { %v442_v18 = vmul.f32 %v438_v11, %v432_v52 }
  0x9d   : > { %v445_v27 = vadd.f32 %v442_v18, %v421_v17  ;;  %v1033_v17 = vld [vmem:[%s1558_s1 + $0x48] sm:$0xff]  ;;  %v1034_v18 = vld [vmem:[%s1558_s1 + $0x50] sm:$0xff] }
  0x9e   : > { %v456_v3 = vpop.permute.xlu0 %455 }
  0x9f   : > { %v400_v59 = vpop.permute.xlu1 %399  ;;  %v466_v23 = vmul.f32 %v462_v14, %v456_v3 }
  0xa0   : > { %v416_v20 = vmul.f32 %v414_v0, %v400_v59 }
  0xa1   : > { %v469_v32 = vadd.f32 %v466_v23, %v445_v27 }
  0xa2   : > { %v448_v22 = vpop.permute.xlu0 %447  ;;  %v419_v28 = vadd.f32 %v416_v20, %v395_v19  ;;  %v1035_v19 = vld [vmem:[%s1558_s1 + $0x58] sm:$0xf] }
  0xa3   : > { %v464_v30 = vmul.f32 %v462_v14, %v448_v22 }
  0xa4   : > { %v428_v5 = vpop.permute.xlu1 %427 }
  0xa5   : > { %v441_v16 = vmul.f32 %v438_v11, %v428_v5 }
  0xa7   : > { %v444_v26 = vadd.f32 %v441_v16, %v420_v21  ;;  %v481_v33 = vpop.permute.xlu0 %480 }
  0xa8   : > { %v424_v13 = vpop.permute.xlu1 %423 }
  0xa9   : > { %v440_v24 = vmul.f32 %v438_v11, %v424_v13 }
  0xab   : > { %v443_v31 = vadd.f32 %v440_v24, %v419_v28  ;;  %v510_v51 = vpop.permute.xlu0 %509 }
  0xad   : > { %v452_v25 = vpop.permute.xlu1 %451  ;;  %v467_v38 = vadd.f32 %v464_v30, %v443_v31 }
  0xae   : > { %v465_v4 = vmul.f32 %v462_v14, %v452_v25 }
  0xaf   : > { %v635_v1 = vpop.permute.xlu0 %634 }
  0xb0   : > { %v468_v29 = vadd.f32 %v465_v4, %v444_v26 }
  0xb2   : > { %v486_v34 = vpop.permute.xlu1 %485  ;;  %v489_v36 = vadd.f32 %v481_v33, %v468_v29 }
  0xb3   : > { %v490_v35 = vadd.f32 %v486_v34, %v469_v32  ;;  %v625_v11 = vpop.permute.xlu0 %624  ;;  %v1043_v34 = vld [vmem:[%s1558_s1 + $0x60] sm:$0xff] }
  0xb4   : > { %v492_v41 = vmax.f32 %v489_v36, 0.0 }
  0xb5   : > { %v493_v37 = vmax.f32 %v490_v35, 0.0 }
  0xb6   : > { %v476_v39 = vpop.permute.xlu1 %475 }
  0xb7   : > { %v488_v40 = vadd.f32 %v476_v39, %v467_v38  ;;  %1073 = vmatpush3.msk.msra.mxu0 %vm527_vm1, %v493_v37  ;;  %1129 = vmatpush3.msk.msra.mxu1 %vm527_vm1, %v493_v37  ;;  %v748_v25 = vpop.permute.xlu0 %747 }
  0xb8   : > { %1074 = vmatprep.subr.mxu0 %v1274_v2  ;;  %1127 = vmatprep.subr.mxu1 %v1274_v2 }
  0xb9   : > { %v491_v42 = vmax.f32 %v488_v40, 0.0  ;;  %1075 = vmatpush3.msra.mxu0 %v492_v41  ;;  %1130 = vmatpush3.msra.mxu1 %v492_v41 }
  0xba   : > { %1076 = vmatprep.subr.mxu0 %v1274_v2  ;;  %1128 = vmatprep.subr.mxu1 %v1274_v2  ;;  %v515_v46 = vpop.permute.xlu1 %514 }
  0xbb   : > { %1077 = vmatpush3.msra.mxu0 %v491_v42  ;;  %1131 = vmatpush3.msra.mxu1 %v491_v42  ;;  %v857_v35 = vpop.permute.xlu0 %856 }
  0xbc   : > { %1079 = vmatmul.mubr.msk.f32.vlgmr.msra.gmra.mxu0 %vm517_vm2, %v1013_v43  ;;  %1085 = vmatmul.mubr.msk.f32.vlgmr.msra.gmra.mxu1 %vm517_vm2, %v1015_v44 }
  0xbd   : > { %1081 = vmatprep.mubr.msk.f32.mxu0 %vm1275_vm6, %v1274_v2  ;;  %1087 = vmatprep.subr.mxu1 %v1274_v2 }
  0xbe   : > { %1093 = vmatprep.mubr.msk.f32.mxu1 %vm1275_vm6, %v1274_v2  ;;  %1102 = vmatprep.subr.mxu0 %v1274_v2  ;;  %v505_v53 = vpop.permute.xlu1 %504 }
  0xc0   : > { %1082 = vmatmul.mubr.msk.f32.gmra.mxu0 %vm517_vm2, %v1014_v45 }
  0xc1   : > { %1108 = vmatprep.mubr.msk.f32.mxu0 %vm1275_vm6, %v1274_v2 }
  0xc2   : > { %v630_v7 = vpop.permute.xlu1 %629 }
  0xc6   : > { %v753_v22 = vpop.permute.xlu1 %752 }
  0xca   : > { %v743_v28 = vpop.permute.xlu1 %742 }
 0x17c   : > { %v597_v47 = vpop.f32.mrf.mxu0  ;;  %v607_v48 = vpop.f32.mrf.mxu1 }
 0x17d   : > { %v608_v49 = vadd.f32 %v607_v48, %v515_v46  ;;  %v598_v55 = vadd.f32 %v597_v47, %v505_v53 }
 0x17e   : > { %v1080_v50 = vpop.f32.mrf.mxu0  ;;  %v1086_v8 = vpop.f32.mrf.mxu1 }
 0x17f   : > { %v613_v52 = vmax.f32 %v608_v49, 0.0  ;;  %v611_v59 = vmax.f32 %v598_v55, 0.0 }
 0x180   : > { %v602_v54 = vpop.f32.mrf.mxu0 }
 0x181   : > { %v603_v56 = vadd.f32 %v602_v54, %v510_v51  ;;  %1088 = vmatpush3.msk.msra.mxu1 %vm527_vm1, %v613_v52 }
 0x182   : > { %v1083_v57 = vpop.f32.mrf.mxu0  ;;  %1089 = vmatprep.subr.mxu1 %v1274_v2 }
 0x183   : > { %v612_v58 = vmax.f32 %v603_v56, 0.0 }
 0x185   : > { %1090 = vmatpush3.msra.mxu1 %v612_v58 }
 0x186   : > { %1091 = vmatprep.subr.mxu1 %v1274_v2 }
 0x187   : > { %1092 = vmatpush3.msra.mxu1 %v611_v59 }
 0x188   : > { %1094 = vmatmul.mubr.msk.f32.vlgmr.msra.gmra.mxu1 %vm517_vm2, %v1023_v60  ;;  %1117 = vmatprep.subr.mxu1 %v1274_v2 }
 0x189   : > { %1096 = vmatprep.mubr.msk.f32.mxu1 %vm1275_vm6, %v1274_v2 }
 0x18c   : > { %1097 = vmatmul.mubr.msk.f32.gmra.mxu1 %vm517_vm2, %v1024_v61 }
 0x18d   : > { %1099 = vmatprep.mubr.msk.f32.mxu1 %vm1275_vm6, %v1274_v2 }
 0x190   : > { %1100 = vmatmul.mubr.msk.f32.gmra.mxu1 %vm517_vm2, %v1025_v62 }
 0x191   : > { %1123 = vmatprep.mubr.msk.f32.mxu1 %vm1275_vm6, %v1274_v2 }
 0x248   : > { %v715_v63 = vpop.f32.mrf.mxu1 }
 0x249   : > { %v716_v13 = vadd.f32 %v715_v63, %v625_v11 }
 0x24a   : > { %v1095_v0 = vpop.f32.mrf.mxu1 }
 0x24b   : > { %v729_v16 = vmax.f32 %v716_v13, 0.0 }
 0x24c   : > { %v720_v5 = vpop.f32.mrf.mxu1 }
 0x24d   : > { %v721_v9 = vadd.f32 %v720_v5, %v630_v7 }
 0x24e   : > { %v1098_v6 = vpop.f32.mrf.mxu1 }
 0x24f   : > { %v730_v15 = vmax.f32 %v721_v9, 0.0 }
 0x250   : > { %v725_v3 = vpop.f32.mrf.mxu1 }
 0x251   : > { %v726_v10 = vadd.f32 %v725_v3, %v635_v1 }
 0x252   : > { %v1101_v12 = vpop.f32.mrf.mxu1 }
 0x253   : > { %v731_v14 = vmax.f32 %v726_v10, 0.0 }
 0x255   : > { %1103 = vmatpush3.msk.msra.mxu0 %vm527_vm1, %v731_v14 }
 0x256   : > { %1104 = vmatprep.subr.mxu0 %v1274_v2 }
 0x257   : > { %1105 = vmatpush3.msra.mxu0 %v730_v15 }
 0x258   : > { %1106 = vmatprep.subr.mxu0 %v1274_v2 }
 0x259   : > { %1107 = vmatpush3.msra.mxu0 %v729_v16 }
 0x25a   : > { %1109 = vmatmul.mubr.msk.f32.vlgmr.msra.gmra.mxu0 %vm517_vm2, %v1033_v17 }
 0x25b   : > { %1111 = vmatprep.mubr.msk.f32.mxu0 %vm1275_vm6, %v1274_v2 }
 0x25e   : > { %1112 = vmatmul.mubr.msk.f32.gmra.mxu0 %vm517_vm2, %v1034_v18 }
 0x25f   : > { %1114 = vmatprep.mubr.msk.f32.mxu0 %vm1275_vm6, %v1274_v2 }
 0x262   : > { %1115 = vmatmul.mubr.msk.f32.gmra.mxu0 %vm517_vm2, %v1035_v19 }
 0x31a   : > { %v833_v20 = vpop.f32.mrf.mxu0 }
 0x31b   : > { %v834_v30 = vadd.f32 %v833_v20, %v743_v28 }
 0x31c   : > { %v1110_v21 = vpop.f32.mrf.mxu0 }
 0x31d   : > { %v847_v33 = vmax.f32 %v834_v30, 0.0 }
 0x31e   : > { %v838_v23 = vpop.f32.mrf.mxu0 }
 0x31f   : > { %v839_v4 = vadd.f32 %v838_v23, %v748_v25 }
 0x320   : > { %v1113_v24 = vpop.f32.mrf.mxu0 }
 0x321   : > { %v848_v32 = vmax.f32 %v839_v4, 0.0 }
 0x322   : > { %v843_v26 = vpop.f32.mrf.mxu0 }
 0x323   : > { %v844_v27 = vadd.f32 %v843_v26, %v753_v22 }
 0x324   : > { %v1116_v29 = vpop.f32.mrf.mxu0 }
 0x325   : > { %v849_v31 = vmax.f32 %v844_v27, 0.0 }
 0x327   : > { %1118 = vmatpush3.msk.msra.mxu1 %vm527_vm1, %v849_v31 }
 0x328   : > { %1119 = vmatprep.subr.mxu1 %v1274_v2 }
 0x329   : > { %1120 = vmatpush3.msra.mxu1 %v848_v32 }
 0x32a   : > { %1121 = vmatprep.subr.mxu1 %v1274_v2 }
 0x32b   : > { %1122 = vmatpush3.msra.mxu1 %v847_v33 }
 0x32c   : > { %1124 = vmatmul.mubr.msk.f32.vlgmr.msra.gmra.mxu1 %vm517_vm2, %v1043_v34 }
 0x3ec   : > { %v931_v36 = vpop.f32.mrf.mxu1 }
 0x3ed   : > { %v932_v37 = vadd.f32 %v931_v36, %v857_v35 }
 0x3ee   : > { %v1125_v38 = vpop.f32.mrf.mxu1 }
 0x3ef   : > { %935 = vst [vmem:[%s158_s28] sm:$0x1] %v932_v37 }
 0x3f0   : > { %1215 = shalt.err (!%p1212_p3)
}
 0x3f1   : > { %s1216_s10 = scalar_lea.hbm %s1522_s5, 16  ;;  %s1220_s19 = scalar_lea.hbm %s1560_s3, 32 }
 0x3f2   : > { %p1217_p4 = scmp.ne.s32.totalorder %s1522_s5, %s1216_s10  ;;  %p1221_p9 = scmp.lt.s32.totalorder %s1522_s5, %s1560_s3 }
 0x3f3   : > { %p1222_p10 = scmp.lt.s32.totalorder %s1220_s19, %s1216_s10 }
 0x3f4   : > { %p1218_p7 = pnand %p1217_p4, %p1335_p5 }
 0x3f5   : > { %p1223_p11 = por %p1222_p10, %p1221_p9 }
 0x3f6   : > { %p1219_p8 = pneg %p1218_p7 }
 0x3f8   : > { %p1224_p12 = pnand %p1223_p11, %p1219_p8 }
 0x3fa   : > { %1227 = shalt.err (!%p1224_p12)
}
 0x3fb   : > { %1136 = dma.vmem_to_hbm [thread:$0]  (%p1335_p5), %s950_s29, 16, %s1522_s5, %s937_s6  }
 0x3fc PF: > { %p1142_p13 = scmp.ge.s32.totalorder %s1262_s15, 2  ;;  %s961_s25 = sand.u32 1, %s1250_s12  }
 0x3fd   : > { %s962_s26 = scalar_lea.sflag [#allocation3], %s961_s25 }
 0x3fe   : > { %p1139_p0 = pnand %p1142_p13, %p1339_p6 }
 0x400   : > { %p1140_p1 = pneg %p1139_p0 }
 0x402   : > { %1245 = dma.done.wait (%p1140_p1), %s962_s26, 16  }
 0x403   : > { %1247 = vsyncadd (%p1140_p1), %s962_s26, 4294967280  ;;  %p13_p2 = scmp.ge.s32.totalorder %s1322_s18, 4   ;;  %s1563_s12 = smov %s1254_s13 }
 0x404   : > { %s1564_s13 = smov %s1258_s14  ;;  %s1565_s14 = smov %s1333_s21 }
 0x405   : > { %s1566_s15 = smov %s1322_s18  ;;  %15 = sbr.rel (!%p13_p2) target bundleno = 3 (0x3), region = 75 }
 0x40a   :  { %966 = vsyncpa [#allocation3], 1 }
 0x40b   :  { %968 = vsyncpa [#allocation3 + $0x1], 1 }

</bundles_post_ra>
